<compile_context>
chip_gen: v7x
topology: tpu7x:2x2x1
jax: 0.10.0
libtpu: 0.0.40
codegen_flags: <defaults>
</compile_context>

<pallas_src>
import jax
import jax.numpy as jnp
from jax.experimental import pallas as pl
from jax.experimental.pallas import tpu as pltpu


def _round_up(x, m):
    return ((x + m - 1) // m) * m


def _default_vmem_budget_bytes():
    """Pick a VMEM budget from the actual chip; conservative fallback = 32 MiB."""
    try:
        info = pltpu.get_tpu_info()
        cap = getattr(info, "vmem_capacity_bytes", None)
        if cap:
            # Half of physical VMEM, never above 64 MiB (v7x-safe), never below 16 MiB.
            return int(min(max(cap // 2, 16 * 1024 * 1024), 64 * 1024 * 1024))
    except Exception:
        pass
    return 32 * 1024 * 1024


def _task_encoder_kernel(x_ref, w_ref, b_ref, o_ref):
    # x_ref: (TM, K)  w_ref: (K, N)  b_ref: (1, N)  o_ref: (TM, N)
    y = jnp.dot(x_ref[...], w_ref[...], preferred_element_type=jnp.float32)
    o_ref[...] = (y + b_ref[...]).astype(o_ref.dtype)  # bias add stays f32


def task_encoder_forward(task, weight_t, bias, *, tile_m=None, min_grid_steps=1,
                         vmem_budget_bytes=None):
    """y = task @ weight_t + bias.

    task:     (B, task_size)
    weight_t: (task_size, input_size)   -- pre-transposed nn.Linear weight
    bias:     (input_size,) or (1, input_size), stored in f32 at init
    tile_m:   None -> auto (largest batch tile fitting the VMEM budget);
              int  -> explicit cap (rounded to a multiple of 8).
    min_grid_steps: set to 2 on v7x for large B so both TensorCores get work.
    """
    B, K = task.shape
    Kw, N = weight_t.shape
    assert K == Kw, (K, Kw)
    assert task.dtype == weight_t.dtype, (task.dtype, weight_t.dtype)
    if bias.ndim == 1:
        bias = bias.reshape(1, -1)
    bias = bias.astype(jnp.float32)
    assert bias.shape == (1, N), bias.shape

    out_dtype = task.dtype
    in_item = jnp.dtype(task.dtype).itemsize
    out_item = jnp.dtype(out_dtype).itemsize

    budget = int(vmem_budget_bytes or _default_vmem_budget_bytes())

    # --- batch tile selection (fill the VMEM budget; fewer, bigger steps) ---
    # Conservative per-step accounting: W + bias counted double-buffered too
    # (they are grid-invariant, so this only leaves extra headroom).
    resident = 2 * (K * N * in_item + N * 4)
    per_row = 2 * (K * in_item + N * out_item)          # double-buffered x + out row
    tm_budget = max(8, ((budget // 2 - resident) // per_row) // 8 * 8)

    if tile_m is None:
        tm = tm_budget
    else:
        tm = min(max(8, (tile_m // 8) * 8), tm_budget)

    if min_grid_steps > 1:
        # Cap the tile so the grid has >= min_grid_steps steps (v7x megacore).
        tm = min(tm, max(8, _round_up(-(-B // min_grid_steps), 8)))

    if tm >= B:
        tm = B                                           # single full-extent block
    grid_m = pl.cdiv(B, tm)

    cost = pl.CostEstimate(
        flops=2 * B * K * N,
        transcendentals=0,
        bytes_accessed=B * K * in_item + K * N * in_item + N * 4 + B * N * out_item,
    )

    # NOTE: W / bias specs could be single-buffered (pipeline_mode=pl.Buffered(1))
    # since their index_map is grid-invariant; at K*N this small it is irrelevant,
    # so we keep the default for maximum portability.
    out = pl.pallas_call(
        _task_encoder_kernel,
        out_shape=jax.ShapeDtypeStruct((B, N), out_dtype),
        grid=(grid_m,),
        in_specs=[
            pl.BlockSpec((tm, K), lambda i: (i, 0)),     # streamed activations
            pl.BlockSpec((K, N), lambda i: (0, 0)),      # resident weight
            pl.BlockSpec((1, N), lambda i: (0, 0)),      # resident bias (f32)
        ],
        out_specs=pl.BlockSpec((tm, N), lambda i: (i, 0)),
        compiler_params=pltpu.CompilerParams(
            dimension_semantics=("parallel",),           # v7x: split batch across TCs
            vmem_limit_bytes=budget,                     # explicit (v5e default is 16 MiB)
        ),
        cost_estimate=cost,
    )(task, weight_t, bias)

    return out


def init_task_encoder_params(key, input_size, task_size, dtype=jnp.float32):
    """One-time parameter prep matching nn.Linear defaults (uniform +/- 1/sqrt(fan_in)).

    Returns weight pre-transposed to (task_size, input_size) in `dtype` and a
    (1, input_size) float32 bias, so the forward wrapper never copies/pads them.
    """
    kw, kb = jax.random.split(key)
    bound = 1.0 / jnp.sqrt(jnp.float32(task_size))
    weight_t = jax.random.uniform(kw, (task_size, input_size), jnp.float32,
                                  minval=-bound, maxval=bound).astype(dtype)
    bias = jax.random.uniform(kb, (1, input_size), jnp.float32,
                              minval=-bound, maxval=bound)
    return weight_t, bias


if __name__ == "__main__":
    key = jax.random.PRNGKey(0)
    k_task, k_params, k_task2 = jax.random.split(key, 3)

    # Shapes consistent with TaskEncoder(input_size, hidden_size, task_size)
    batch, input_size, hidden_size, task_size = 2, 32, 32, 8

    task = jax.random.normal(k_task, (batch, task_size), jnp.float32)
    weight_t, bias = init_task_encoder_params(k_params, input_size, task_size)

    # Case 1: toy shapes from the module (single full-extent block, no padding,
    # no wrapper copies, no output slice).
    out = jax.block_until_ready(task_encoder_forward(task, weight_t, bias))
    ref = task @ weight_t + bias
    assert out.shape == (batch, input_size)
    assert jnp.allclose(out, ref, atol=1e-5, rtol=1e-5)

    # Case 2: larger batch with an explicit tile -> multi-step grid with a
    # partial boundary block (writeback of the padded tail is masked by Pallas).
    big_batch = 300
    task2 = jax.random.normal(k_task2, (big_batch, task_size), jnp.float32)
    out2 = jax.block_until_ready(
        task_encoder_forward(task2, weight_t, bias, tile_m=128))
    ref2 = task2 @ weight_t + bias
    assert out2.shape == (big_batch, input_size)
    assert jnp.allclose(out2, ref2, atol=1e-5, rtol=1e-5)

    # Case 3: auto tile but keep >=2 grid steps (v7x megacore-friendly split).
    out3 = jax.block_until_ready(
        task_encoder_forward(task2, weight_t, bias, min_grid_steps=2))
    assert jnp.allclose(out3, ref2, atol=1e-5, rtol=1e-5)

    # Case 4: bf16 MXU path (bf16 x / W prepared outside, f32 accumulate + f32
    # bias add inside the kernel, bf16 store).
    weight_bf16, bias_f32 = init_task_encoder_params(k_params, input_size,
                                                     task_size, dtype=jnp.bfloat16)
    out4 = jax.block_until_ready(
        task_encoder_forward(task2.astype(jnp.bfloat16), weight_bf16, bias_f32))
    assert out4.dtype == jnp.bfloat16
    assert jnp.allclose(out4.astype(jnp.float32), ref2, atol=5e-2, rtol=5e-2)

    print("KERNEL_OK")
</pallas_src>

<mosaic_0001>
module attributes {stable_mosaic.version = 11 : i64} {
  func.func @_task_encoder_kernel(%arg0: i32, %arg1: memref<2x8xf32, #tpu.memory_space<vmem>>, %arg2: memref<8x32xf32, #tpu.memory_space<vmem>>, %arg3: memref<1x32xf32, #tpu.memory_space<vmem>>, %arg4: memref<2x32xf32, #tpu.memory_space<vmem>>) attributes {dimension_semantics = [#tpu.dimension_semantics<parallel>], iteration_bounds = array<i64: 1>, scalar_prefetch = 0 : i64, scratch_operands = 0 : i64, tpu.core_type = #tpu.core_type<tc>, window_params = [{transform_indices = @transform_0, window_bounds = array<i64: 2, 8>}, {pipeline_mode = #tpu.pipeline_mode<synchronous>, transform_indices = @transform_1, window_bounds = array<i64: 8, 32>}, {pipeline_mode = #tpu.pipeline_mode<synchronous>, transform_indices = @transform_2, window_bounds = array<i64: 1, 32>}, {transform_indices = @transform_3, window_bounds = array<i64: 2, 32>}]} {
    %c0 = arith.constant 0 : index
    %c0_0 = arith.constant 0 : index
    %0 = vector.load %arg1[%c0, %c0_0] : memref<2x8xf32, #tpu.memory_space<vmem>>, vector<2x8xf32>
    %c0_1 = arith.constant 0 : index
    %c0_2 = arith.constant 0 : index
    %1 = vector.load %arg2[%c0_1, %c0_2] : memref<8x32xf32, #tpu.memory_space<vmem>>, vector<8x32xf32>
    %cst = arith.constant dense<0.000000e+00> : vector<2x32xf32>
    %2 = tpu.matmul %0, %1, %cst {dimension_numbers = #tpu.dot_dimension_numbers<[1], [0], [0], [1], [0, 0, 1, 1], [], []>} : vector<2x8xf32>, vector<8x32xf32>, vector<2x32xf32> -> vector<2x32xf32>
    %c0_3 = arith.constant 0 : index
    %c0_4 = arith.constant 0 : index
    %3 = vector.load %arg3[%c0_3, %c0_4] : memref<1x32xf32, #tpu.memory_space<vmem>>, vector<1x32xf32>
    %4 = vector.broadcast %3 : vector<1x32xf32> to vector<2x32xf32>
    %5 = arith.addf %2, %4 : vector<2x32xf32>
    %c0_5 = arith.constant 0 : index
    %c0_6 = arith.constant 0 : index
    %6 = vector.load %arg4[%c0_5, %c0_6] : memref<2x32xf32, #tpu.memory_space<vmem>>, vector<2x32xf32>
    tpu.vector_store %arg4[%c0_5, %c0_6], %5 {strides = array<i32>} : memref<2x32xf32, #tpu.memory_space<vmem>>, vector<2x32xf32>,
    return
  }
  func.func @transform_0(%arg0: i32) -> (i32, i32) {
    %c0_i32 = arith.constant 0 : i32
    %c0_i32_0 = arith.constant 0 : i32
    return %arg0, %c0_i32 : i32, i32
  }
  func.func @transform_1(%arg0: i32) -> (i32, i32) {
    %c0_i32 = arith.constant 0 : i32
    %c0_i32_0 = arith.constant 0 : i32
    %c0_i32_1 = arith.constant 0 : i32
    return %c0_i32, %c0_i32_0 : i32, i32
  }
  func.func @transform_2(%arg0: i32) -> (i32, i32) {
    %c0_i32 = arith.constant 0 : i32
    %c0_i32_0 = arith.constant 0 : i32
    %c0_i32_1 = arith.constant 0 : i32
    return %c0_i32, %c0_i32_0 : i32, i32
  }
  func.func @transform_3(%arg0: i32) -> (i32, i32) {
    %c0_i32 = arith.constant 0 : i32
    %c0_i32_0 = arith.constant 0 : i32
    return %arg0, %c0_i32 : i32, i32
  }
}

</mosaic_0001>

<bundles_post_ra>
// kernel: tpu_custom_call.1
= control target key start
LH: loop header
LB: loop body
LE: loop exit
PB: predicated region body
PF: predicated region fallthrough
CT: control target
= control target key end

     0   :  { %8 = vsyncpa [#allocation3], 0  ;;  %s290_s0 = inlined_call_operand.hbm [shape: f32[2,8], index: 0, kind: input, shape index: {}]   ;;  %s291_s1 = inlined_call_operand.hbm [shape: f32[8,32], index: 1, kind: input, shape index: {}]   ;;  %s292_s2 = inlined_call_operand.vmem [shape: f32[1,32], index: 2, kind: input, shape index: {}]   ;;  %s293_s3 = inlined_call_operand.hbm [shape: f32[2,32], index: 3, kind: output, shape index: {}]  }
   0x1   :  { %9 = vsyncpa [#allocation6], 0 }
   0x2   :  { %10 = vsyncpa [#allocation4], 0  ;;  %s226_s12 = smov [#allocation2]   ;;  %s227_s14 = smov [#allocation5]  }
   0x3   :  { %s17_s13 = sshll.u32 %s226_s12, 4  ;;  %s27_s15 = sshll.u32 %s227_s14, 4  ;;  %s18_s13 = int_to_ptr.vmem [resolvable:$true] %s17_s13  ;;  %s28_s15 = int_to_ptr.vmem [resolvable:$true] %s27_s15 }
   0x4   :  { %s154_s18 = scalar_lea.hbm %s290_s0, 32 }
   0x5   :  { %p155_p0 = scmp.ne.s32.totalorder %s290_s0, %s154_s18  ;;  %p158_p1 = scmp.lt.u32.totalorder %s154_s18, %s290_s0 }
   0x7   :  { %p160_p2 = pnand %p158_p1, %p155_p0 }
   0x9   :  { %163 = shalt.err (!%p160_p2)
}
   0xa   :  { %s164_s23 = scalar_lea.vmem %s18_s13, 32  ;;  %p169_p4 = scmp.lt.s32.totalorder %s18_s13, %s18_s13 }
   0xb   :  { %p165_p3 = scmp.ne.s32.totalorder %s18_s13, %s164_s23  ;;  %p170_p5 = scmp.lt.s32.totalorder %s164_s23, %s164_s23 }
   0xd   :  { %p171_p6 = por %p170_p5, %p169_p4 }
   0xf   :  { %p172_p7 = pnand %p171_p6, %p165_p3 }
  0x11   :  { %175 = shalt.err (!%p172_p7)
}
  0x12   :  { %20 = dma.hbm_to_vmem [thread:$0]  %s290_s0, 32, %s18_s13, [#allocation3]  }
  0x13   :  { %s176_s28 = scalar_lea.hbm %s291_s1, 128 }
  0x14   :  { %p177_p8 = scmp.ne.s32.totalorder %s291_s1, %s176_s28  ;;  %p180_p9 = scmp.lt.u32.totalorder %s176_s28, %s291_s1 }
  0x16   :  { %p182_p10 = pnand %p180_p9, %p177_p8 }
  0x18   :  { %185 = shalt.err (!%p182_p10)
}
  0x19   :  { %s186_s6 = scalar_lea.vmem %s28_s15, 128  ;;  %p191_p12 = scmp.lt.s32.totalorder %s28_s15, %s28_s15 }
  0x1a   :  { %p187_p11 = scmp.ne.s32.totalorder %s28_s15, %s186_s6  ;;  %p192_p13 = scmp.lt.s32.totalorder %s186_s6, %s186_s6 }
  0x1c   :  { %p193_p0 = por %p192_p13, %p191_p12 }
  0x1e   :  { %p194_p1 = pnand %p193_p0, %p187_p11 }
  0x20   :  { %197 = shalt.err (!%p194_p1)
}
  0x21   :  { %30 = dma.hbm_to_vmem [thread:$0]  %s291_s1, 128, %s28_s15, [#allocation6]  }
  0x22   :  { %220 = dma.done.wait [#allocation3], 32  }
  0x23   :  { %221 = vsyncadd [#allocation3], 4294967264 }
  0x24   :  { %222 = dma.done.wait [#allocation6], 128  }
  0x25   :  { %223 = vsyncadd [#allocation6], 4294967168  ;;  %v228_v0 = vmov 0.0   ;;  %vm229_vm0 = vmmov 0   ;;  %vm48_vm1 = vcmask 64512   ;;  %v40_v1 = vld [vmem:[#allocation5] sm:$0xff] }
  0x26   :  { %144 = vmatprep.subr.mxu0 %v228_v0  ;;  %146 = vmatprep.mubr.msk.f32.mxu0 %vm229_vm0, %v228_v0  ;;  %v39_v2 = vld [vmem:[#allocation2] sm:$0x3]  ;;  %s230_s10 = smov [#allocation7]   ;;  %vm122_vm2 = vcmask 254976  }
  0x27   :  { %145 = vmatpush3.msra.mxu0 %v40_v1  ;;  %v140_v3 = vld [vmem:[%s292_s2] ss:$0 sm:$0xff]  ;;  %s130_s11 = sshll.u32 %s230_s10, 4  ;;  %s131_s11 = int_to_ptr.vmem [resolvable:$true] %s130_s11 }
  0x28   :  { %147 = vmatmul.mubr.msk.f32.vlgmr.msra.gmra.mrb[0].mxu0 %vm48_vm1, %v39_v2  ;;  %s198_s1 = scalar_lea.vmem %s131_s11, 32  ;;  %p203_p3 = scmp.lt.s32.totalorder %s131_s11, %s131_s11 }
  0x29   :  { %p199_p2 = scmp.ne.s32.totalorder %s131_s11, %s198_s1  ;;  %p204_p4 = scmp.lt.s32.totalorder %s198_s1, %s198_s1 }
  0x2b   :  { %p205_p5 = por %p204_p4, %p203_p3 }
  0x2d   :  { %p206_p6 = pnand %p205_p5, %p199_p2 }
  0xfb   :  { %v118_v4 = vpop.f32.mrb[0].mxu0 }
  0xfc   :  { %v119_v5 = vadd.f32 %v140_v3, %v118_v4  ;;  %v148_v6 = vpop.f32.mrb[1].mxu0 }
  0xfe   :  { %123 = vst.msk [vmem:[#allocation7] sm:$0x3] %vm122_vm2, %v119_v5 }
  0xff   :  { %209 = shalt.err (!%p206_p6)
}
 0x100   :  { %s210_s14 = scalar_lea.hbm %s293_s3, 32 }
 0x101   :  { %p211_p7 = scmp.ne.s32.totalorder %s293_s3, %s210_s14  ;;  %p214_p8 = scmp.lt.u32.totalorder %s210_s14, %s293_s3 }
 0x103   :  { %p216_p9 = pnand %p214_p8, %p211_p7 }
 0x105   :  { %219 = shalt.err (!%p216_p9)
}
 0x106   :  { %133 = dma.vmem_to_hbm [thread:$0]  %s131_s11, 32, %s293_s3, [#allocation4]  }
 0x107   :  { %224 = dma.done.wait [#allocation4], 32  }
 0x108   :  { %225 = vsyncadd [#allocation4], 4294967264 }
 0x109   :  { %137 = vsyncpa [#allocation3], 1 }
 0x10a   :  { %138 = vsyncpa [#allocation6], 1 }
 0x10b   :  { %139 = vsyncpa [#allocation4], 1 }

</bundles_post_ra>
